<compile_context>
chip_gen: v7x
topology: tpu7x:2x2x1
jax: 0.10.0
libtpu: 0.0.40
codegen_flags: <defaults>
</compile_context>

<pallas_src>
import jax
import jax.numpy as jnp
from jax.experimental import pallas as pl
from jax.experimental.pallas import tpu as pltpu


def _mean_max_pool_kernel(h_ref, m_ref, o_ref, sum_acc, cnt_acc, max_acc):
    # h_ref:   (TB, TS, H) hidden-state tile, native dtype
    # m_ref:   (TB, TS, 1) attention-mask tile, f32
    # o_ref:   (TB, 2, H)  output tile: row 0 = masked mean, row 1 = max
    # sum_acc: (TB, H) f32 running masked sum
    # cnt_acc: (TB, 1) f32 running mask count
    # max_acc: (TB, H) native-dtype running max
    s_idx = pl.program_id(1)

    @pl.when(s_idx == 0)
    def _():
        sum_acc[...] = jnp.zeros_like(sum_acc)
        cnt_acc[...] = jnp.zeros_like(cnt_acc)
        max_acc[...] = jnp.full_like(max_acc, -jnp.inf)

    h = h_ref[...]                                   # native dtype
    m = m_ref[...]                                   # (TB, TS, 1) f32

    # Masked mean accumulation (f32), matching torch's mask.float() product.
    sum_acc[...] += jnp.sum(h.astype(jnp.float32) * m, axis=1)   # (TB, H)
    cnt_acc[...] += jnp.sum(m, axis=1)                           # (TB, 1)

    # Max pooling over the sequence axis (mask NOT applied, as in torch),
    # accumulated in the native dtype.
    max_acc[...] = jnp.maximum(max_acc[...], jnp.max(h, axis=1))

    @pl.when(s_idx == pl.num_programs(1) - 1)
    def _():
        denom = jnp.maximum(cnt_acc[...], 1e-9)      # clamp(min=1e-9)
        mean = sum_acc[...] / denom                  # (TB, H) f32
        # Lane-dense stores: both halves start at lane 0, H lanes wide.
        o_ref[:, 0:1, :] = mean[:, None, :].astype(o_ref.dtype)
        o_ref[:, 1:2, :] = max_acc[...][:, None, :].astype(o_ref.dtype)


def _pick_tiles(B, S, H, budget_bytes=6 * 1024 * 1024):
    """Pick (TB, TS): batch rows / sequence rows per grid step.

    The budget is counted at f32 width so it covers the in-kernel f32 temp
    and is conservative for sub-32-bit inputs; with double buffering this
    keeps total VMEM well under the 32 MiB scoped limit set below.
    """
    bpe = 4
    min_ts = S if S < 8 else 8

    def fits(tb_, ts_):
        return tb_ * ts_ * H * bpe <= budget_bytes

    # Largest power-of-two divisor of B (capped at 32) that fits at min_ts.
    tb = 1
    for cand in (32, 16, 8, 4, 2, 1):
        if B % cand == 0 and fits(cand, min_ts):
            tb = cand
            break

    # Largest sequence tile: full S if it fits, else the largest divisor of S
    # that is a multiple of 8 (sublane rule) and fits the budget.
    if fits(tb, S):
        ts = S
    else:
        cands = [t for t in range(8, S, 8) if S % t == 0 and fits(tb, t)]
        if cands:
            ts = max(cands)
        else:
            # No clean sequence tiling: keep the full S and shrink TB instead
            # (stays a power-of-two divisor of B).
            ts = S
            while tb > 1 and not fits(tb, S):
                tb //= 2
    return tb, ts


def mean_max_pooling(last_hidden_state, attention_mask):
    """Pallas implementation of MeanMaxPooling.forward.

    Args:
      last_hidden_state: (B, S, H) float array.
      attention_mask:    (B, S) array (0/1), any numeric dtype.
    Returns:
      (B, 2*H) array, dtype of last_hidden_state: [masked mean ; max].
    """
    B, S, H = last_hidden_state.shape
    dtype = last_hidden_state.dtype
    itemsize = jnp.dtype(dtype).itemsize
    tb, ts = _pick_tiles(B, S, H)

    # Mask -> (B, S, 1) f32 in the wrapper (tiny vs. the hidden states); the
    # block's last dim then equals the full array extent.
    mask3 = attention_mask.reshape(B, S, 1).astype(jnp.float32)

    cost = pl.CostEstimate(
        flops=3 * B * S * H,
        transcendentals=0,
        bytes_accessed=B * S * H * itemsize + B * S * 4 + B * 2 * H * itemsize,
    )

    out = pl.pallas_call(
        _mean_max_pool_kernel,
        out_shape=jax.ShapeDtypeStruct((B, 2, H), dtype),
        grid=(B // tb, S // ts),
        in_specs=[
            pl.BlockSpec((tb, ts, H), lambda b, s: (b, s, 0)),
            pl.BlockSpec((tb, ts, 1), lambda b, s: (b, s, 0)),
        ],
        # Same output block across the S (reduction) axis -> resident output.
        out_specs=pl.BlockSpec((tb, 2, H), lambda b, s: (b, 0, 0)),
        scratch_shapes=[
            pltpu.VMEM((tb, H), jnp.float32),   # running masked sum
            pltpu.VMEM((tb, 1), jnp.float32),   # running mask count
            pltpu.VMEM((tb, H), dtype),         # running max (native dtype)
        ],
        compiler_params=pltpu.CompilerParams(
            dimension_semantics=("parallel", "arbitrary"),
            vmem_limit_bytes=32 * 1024 * 1024,
        ),
        cost_estimate=cost,
    )(last_hidden_state, mask3)

    # (B, 2, H) -> (B, 2*H): contiguous, free; matches torch.cat([mean, max], 1).
    return out.reshape(B, 2 * H)


def _reference(last_hidden_state, attention_mask):
    # Pure-JAX reference mirroring the PyTorch module.
    m = attention_mask[..., None].astype(jnp.float32)
    sum_emb = jnp.sum(last_hidden_state * m, axis=1)
    sum_mask = jnp.clip(jnp.sum(m, axis=1), 1e-9, None)
    mean_emb = sum_emb / sum_mask
    max_emb = jnp.max(last_hidden_state, axis=1)
    return jnp.concatenate([mean_emb, max_emb], axis=1)


if __name__ == "__main__":
    key = jax.random.PRNGKey(0)
    k1, k2 = jax.random.split(key)

    B, S, H = 2, 8, 32
    last_hidden_state = jax.random.normal(k1, (B, S, H), dtype=jnp.float32)
    attention_mask = (jax.random.uniform(k2, (B, S)) > 0.3).astype(jnp.int32)
    # Ensure at least one valid token per row (typical BERT masks).
    attention_mask = attention_mask.at[:, 0].set(1)

    out = mean_max_pooling(last_hidden_state, attention_mask)
    out = jax.block_until_ready(out)

    ref = _reference(last_hidden_state, attention_mask)
    assert out.shape == (B, 2 * H)
    assert jnp.allclose(out, ref, atol=1e-5, rtol=1e-5)

    print("KERNEL_OK")
</pallas_src>

<mosaic_0001>
module attributes {stable_mosaic.version = 11 : i64} {
  func.func @_mean_max_pool_kernel(%arg0: i32, %arg1: i32, %arg2: memref<2x8x32xf32, #tpu.memory_space<vmem>>, %arg3: memref<2x8x1xf32, #tpu.memory_space<vmem>>, %arg4: memref<2x2x32xf32, #tpu.memory_space<vmem>>, %arg5: memref<2x32xf32, #tpu.memory_space<vmem>>, %arg6: memref<2x1xf32, #tpu.memory_space<vmem>>, %arg7: memref<2x32xf32, #tpu.memory_space<vmem>>) attributes {dimension_semantics = [#tpu.dimension_semantics<parallel>, #tpu.dimension_semantics<arbitrary>], iteration_bounds = array<i64: 1, 1>, scalar_prefetch = 0 : i64, scratch_operands = 3 : i64, tpu.core_type = #tpu.core_type<tc>, window_params = [{transform_indices = @transform_0, window_bounds = array<i64: 2, 8, 32>}, {transform_indices = @transform_1, window_bounds = array<i64: 2, 8, 1>}, {transform_indices = @transform_2, window_bounds = array<i64: 2, 2, 32>}]} {
    %c0_i32 = arith.constant 0 : i32
    %0 = arith.cmpi eq, %arg1, %c0_i32 : i32
    %1 = arith.extui %0 : i1 to i32
    %c0_i32_0 = arith.constant 0 : i32
    %2 = arith.cmpi ne, %1, %c0_i32_0 : i32
    scf.if %2 {
      %cst_22 = arith.constant 0.000000e+00 : f32
      %22 = vector.broadcast %cst_22 : f32 to vector<2x32xf32>
      %c0_23 = arith.constant 0 : index
      %c0_24 = arith.constant 0 : index
      %23 = vector.load %arg5[%c0_23, %c0_24] : memref<2x32xf32, #tpu.memory_space<vmem>>, vector<2x32xf32>
      tpu.vector_store %arg5[%c0_23, %c0_24], %22 {strides = array<i32>} : memref<2x32xf32, #tpu.memory_space<vmem>>, vector<2x32xf32>,
      %cst_25 = arith.constant 0.000000e+00 : f32
      %24 = vector.broadcast %cst_25 : f32 to vector<2x1xf32>
      %c0_26 = arith.constant 0 : index
      %c0_27 = arith.constant 0 : index
      %25 = vector.load %arg6[%c0_26, %c0_27] : memref<2x1xf32, #tpu.memory_space<vmem>>, vector<2x1xf32>
      tpu.vector_store %arg6[%c0_26, %c0_27], %24 {strides = array<i32>} : memref<2x1xf32, #tpu.memory_space<vmem>>, vector<2x1xf32>,
      %cst_28 = arith.constant 0xFF800000 : f32
      %26 = vector.broadcast %cst_28 : f32 to vector<2x32xf32>
      %c0_29 = arith.constant 0 : index
      %c0_30 = arith.constant 0 : index
      %27 = vector.load %arg7[%c0_29, %c0_30] : memref<2x32xf32, #tpu.memory_space<vmem>>, vector<2x32xf32>
      tpu.vector_store %arg7[%c0_29, %c0_30], %26 {strides = array<i32>} : memref<2x32xf32, #tpu.memory_space<vmem>>, vector<2x32xf32>,
    } else {
    }
    %c0 = arith.constant 0 : index
    %c0_1 = arith.constant 0 : index
    %c0_2 = arith.constant 0 : index
    %3 = vector.load %arg2[%c0, %c0_1, %c0_2] : memref<2x8x32xf32, #tpu.memory_space<vmem>>, vector<2x8x32xf32>
    %c0_3 = arith.constant 0 : index
    %c0_4 = arith.constant 0 : index
    %c0_5 = arith.constant 0 : index
    %4 = vector.load %arg3[%c0_3, %c0_4, %c0_5] : memref<2x8x1xf32, #tpu.memory_space<vmem>>, vector<2x8x1xf32>
    %c0_6 = arith.constant 0 : index
    %c0_7 = arith.constant 0 : index
    %5 = vector.load %arg5[%c0_6, %c0_7] : memref<2x32xf32, #tpu.memory_space<vmem>>, vector<2x32xf32>
    %6 = vector.broadcast %4 : vector<2x8x1xf32> to vector<2x8x32xf32>
    %7 = arith.mulf %3, %6 : vector<2x8x32xf32>
    %cst = arith.constant dense<0.000000e+00> : vector<2x32xf32>
    %8 = vector.multi_reduction <add>, %7, %cst [1] : vector<2x8x32xf32> to vector<2x32xf32>
    %9 = arith.addf %5, %8 : vector<2x32xf32>
    %c0_8 = arith.constant 0 : index
    %c0_9 = arith.constant 0 : index
    %10 = vector.load %arg5[%c0_8, %c0_9] : memref<2x32xf32, #tpu.memory_space<vmem>>, vector<2x32xf32>
    tpu.vector_store %arg5[%c0_8, %c0_9], %9 {strides = array<i32>} : memref<2x32xf32, #tpu.memory_space<vmem>>, vector<2x32xf32>,
    %c0_10 = arith.constant 0 : index
    %c0_11 = arith.constant 0 : index
    %11 = vector.load %arg6[%c0_10, %c0_11] : memref<2x1xf32, #tpu.memory_space<vmem>>, vector<2x1xf32>
    %cst_12 = arith.constant dense<0.000000e+00> : vector<2x1xf32>
    %12 = vector.multi_reduction <add>, %4, %cst_12 [1] : vector<2x8x1xf32> to vector<2x1xf32>
    %13 = arith.addf %11, %12 : vector<2x1xf32>
    %c0_13 = arith.constant 0 : index
    %c0_14 = arith.constant 0 : index
    %14 = vector.load %arg6[%c0_13, %c0_14] : memref<2x1xf32, #tpu.memory_space<vmem>>, vector<2x1xf32>
    tpu.vector_store %arg6[%c0_13, %c0_14], %13 {strides = array<i32>} : memref<2x1xf32, #tpu.memory_space<vmem>>, vector<2x1xf32>,
    %c0_15 = arith.constant 0 : index
    %c0_16 = arith.constant 0 : index
    %15 = vector.load %arg7[%c0_15, %c0_16] : memref<2x32xf32, #tpu.memory_space<vmem>>, vector<2x32xf32>
    %cst_17 = arith.constant dense<0xFF800000> : vector<2x32xf32>
    %16 = vector.multi_reduction <maximumf>, %3, %cst_17 [1] : vector<2x8x32xf32> to vector<2x32xf32>
    %17 = arith.maximumf %15, %16 : vector<2x32xf32>
    %c0_18 = arith.constant 0 : index
    %c0_19 = arith.constant 0 : index
    %18 = vector.load %arg7[%c0_18, %c0_19] : memref<2x32xf32, #tpu.memory_space<vmem>>, vector<2x32xf32>
    tpu.vector_store %arg7[%c0_18, %c0_19], %17 {strides = array<i32>} : memref<2x32xf32, #tpu.memory_space<vmem>>, vector<2x32xf32>,
    %c0_i32_20 = arith.constant 0 : i32
    %19 = arith.cmpi eq, %arg1, %c0_i32_20 : i32
    %20 = arith.extui %19 : i1 to i32
    %c0_i32_21 = arith.constant 0 : i32
    %21 = arith.cmpi ne, %20, %c0_i32_21 : i32
    scf.if %21 {
      %c0_22 = arith.constant 0 : index
      %c0_23 = arith.constant 0 : index
      %22 = vector.load %arg6[%c0_22, %c0_23] : memref<2x1xf32, #tpu.memory_space<vmem>>, vector<2x1xf32>
      %cst_24 = arith.constant 9.99999971E-10 : f32
      %23 = vector.broadcast %cst_24 : f32 to vector<2x1xf32>
      %24 = arith.maximumf %22, %23 : vector<2x1xf32>
      %c0_25 = arith.constant 0 : index
      %c0_26 = arith.constant 0 : index
      %25 = vector.load %arg5[%c0_25, %c0_26] : memref<2x32xf32, #tpu.memory_space<vmem>>, vector<2x32xf32>
      %26 = vector.broadcast %24 : vector<2x1xf32> to vector<2x32xf32>
      %27 = arith.divf %25, %26 : vector<2x32xf32>
      %28 = vector.shape_cast %27 : vector<2x32xf32> to vector<2x1x32xf32>
      %c0_27 = arith.constant 0 : index
      %c0_28 = arith.constant 0 : index
      %c0_29 = arith.constant 0 : index
      %29 = vector.load %arg4[%c0_27, %c0_28, %c0_29] : memref<2x2x32xf32, #tpu.memory_space<vmem>>, vector<2x1x32xf32>
      tpu.vector_store %arg4[%c0_27, %c0_28, %c0_29], %28 {strides = array<i32>} : memref<2x2x32xf32, #tpu.memory_space<vmem>>, vector<2x1x32xf32>,
      %c0_30 = arith.constant 0 : index
      %c0_31 = arith.constant 0 : index
      %30 = vector.load %arg7[%c0_30, %c0_31] : memref<2x32xf32, #tpu.memory_space<vmem>>, vector<2x32xf32>
      %31 = vector.shape_cast %30 : vector<2x32xf32> to vector<2x1x32xf32>
      %c0_32 = arith.constant 0 : index
      %c1 = arith.constant 1 : index
      %c0_33 = arith.constant 0 : index
      %32 = vector.load %arg4[%c0_32, %c1, %c0_33] : memref<2x2x32xf32, #tpu.memory_space<vmem>>, vector<2x1x32xf32>
      tpu.vector_store %arg4[%c0_32, %c1, %c0_33], %31 {strides = array<i32>} : memref<2x2x32xf32, #tpu.memory_space<vmem>>, vector<2x1x32xf32>,
    } else {
    }
    return
  }
  func.func @transform_0(%arg0: i32, %arg1: i32) -> (i32, i32, i32) {
    %c0_i32 = arith.constant 0 : i32
    %c0_i32_0 = arith.constant 0 : i32
    return %arg0, %arg1, %c0_i32 : i32, i32, i32
  }
  func.func @transform_1(%arg0: i32, %arg1: i32) -> (i32, i32, i32) {
    %c0_i32 = arith.constant 0 : i32
    %c0_i32_0 = arith.constant 0 : i32
    return %arg0, %arg1, %c0_i32 : i32, i32, i32
  }
  func.func @transform_2(%arg0: i32, %arg1: i32) -> (i32, i32, i32) {
    %c0_i32 = arith.constant 0 : i32
    %c0_i32_0 = arith.constant 0 : i32
    %c0_i32_1 = arith.constant 0 : i32
    return %arg0, %c0_i32, %c0_i32_0 : i32, i32, i32
  }
}

</mosaic_0001>

<bundles_post_ra>
// kernel: tpu_custom_call.1
= control target key start
LH: loop header
LB: loop body
LE: loop exit
PB: predicated region body
PF: predicated region fallthrough
CT: control target
= control target key end

     0   :  { %vm62_vm0 = vcmask 7168   ;;  %v226_v2 = vmov 0   ;;  %vm18_vm1 = vcmask 1024   ;;  %v227_v7 = vmov 0.0   ;;  %s289_s0 = inlined_call_operand.vmem [shape: f32[2,8,32], index: 0, kind: input, shape index: {}]   ;;  %s290_s1 = inlined_call_operand.vmem [shape: f32[2,8,1], index: 1, kind: input, shape index: {}]   ;;  %s291_s2 = inlined_call_operand.hbm [shape: f32[2,2,32], index: 2, kind: output, shape index: {}]  }
   0x1   :  { %v23_v0 = vld [vmem:[%s290_s1] sm:$0xff]  ;;  %v24_v1 = vld [vmem:[%s290_s1 + $0x8] sm:$0xff]  ;;  %198 = vset.pattern.permute.xlu0 %v226_v2  ;;  %199 = vset.pattern.permute.xlu1 %v226_v2  ;;  %19 = vst.msk [vmem:[#allocation3] sm:$0x3] %vm18_vm1, %v227_v7 }
   0x2   :  { %v63_v3 = vsel %vm62_vm0, %v23_v0, 0.0  ;;  %v70_v4 = vsel %vm62_vm0, %v24_v1, 0.0  ;;  %28 = vperm.xlu0 %198, %v23_v0  }
   0x3   :  { %v64_v5 = vrot.slane %v63_v3, 4  ;;  %v71_v6 = vrot.slane %v70_v4, 4 }
   0x4   :  { %7 = vsyncpa [#allocation6], 0  ;;  %vm55_vm2 = vcmask 1041409   ;;  %vm16_vm3 = vcmask 254976   ;;  %vm38_vm4 = vcmask 261120   ;;  %v21_v20 = vld [vmem:[%s289_s0] sm:$0xff]  ;;  %v122_v45 = vlaneseq }
   0x5   :  { %v65_v8 = vadd.f32 %v64_v5, %v63_v3  ;;  %v72_v9 = vadd.f32 %v71_v6, %v70_v4  ;;  %17 = vst.msk [vmem:[#allocation2] sm:$0x3] %vm16_vm3, %v227_v7  ;;  %v85_v22 = vsel %vm38_vm4, %v21_v20, -inf  ;;  %v228_v24 = vmov -inf   ;;  %v22_v25 = vld [vmem:[%s289_s0 + $0x8] sm:$0xff]  ;;  %s230_s0 = smov [#allocation5]  }
   0x6   :  { %33 = vperm.xlu0 %198, %v24_v1   ;;  %v86_v23 = vrot.slane %v85_v22, 4  ;;  %20 = vst.msk [vmem:[#allocation4] sm:$0x3] %vm16_vm3, %v228_v24  ;;  %v92_v27 = vsel %vm38_vm4, %v22_v25, -inf  ;;  %v229_v43 = vmov 1966171168  }
   0x7   :  { %v66_v10 = vrot.slane %v65_v8, 2  ;;  %v73_v11 = vrot.slane %v72_v9, 2  ;;  %v93_v28 = vrot.slane %v92_v27, 4  ;;  %v120_v44 = vunpack.c.l.s4 %v229_v43  ;;  %s179_s16 = sshll.u32 %s230_s0, 4  ;;  %s180_s16 = int_to_ptr.vmem [resolvable:$true] %s179_s16 }
   0x8   :  { %v61_v18 = vld [vmem:[#allocation3] sm:$0x3]  ;;  %v87_v26 = vmax.f32 %v85_v22, %v86_v23  ;;  %v123_v47 = vshrl.u32 %v122_v45, 7  ;;  %vm143_vm5 = vcmask 253952   ;;  %s202_s17 = scalar_lea.vmem %s180_s16, 64  ;;  %p207_p1 = scmp.lt.s32.totalorder %s180_s16, %s180_s16 }
   0x9   :  { %v67_v12 = vadd.f32 %v66_v10, %v65_v8  ;;  %v74_v13 = vadd.f32 %v73_v11, %v72_v9  ;;  %v94_v30 = vmax.f32 %v92_v27, %v93_v28  ;;  %v121_v46 = vunpack.c.0.s8 %v120_v44  ;;  %p203_p0 = scmp.ne.s32.totalorder %s180_s16, %s202_s17  ;;  %p208_p2 = scmp.lt.s32.totalorder %s202_s17, %s202_s17 }
   0xa   :  { %v88_v29 = vrot.slane %v87_v26, 2 }
   0xb   :  { %v68_v14 = vrot.slane %v67_v12, 1  ;;  %v75_v15 = vrot.slane %v74_v13, 1  ;;  %v95_v32 = vrot.slane %v94_v30, 2  ;;  %v124_v49 = vsub.s32 %v121_v46, %v123_v47  ;;  %p209_p3 = por %p208_p2, %p207_p1 }
   0xc   :  { %v89_v31 = vmax.f32 %v87_v26, %v88_v29  ;;  %v25_v6 = vld [vmem:[#allocation2] sm:$0x3] }
   0xd   :  { %v69_v16 = vadd.f32 %v68_v14, %v67_v12  ;;  %v76_v17 = vadd.f32 %v75_v15, %v74_v13  ;;  %v96_v36 = vmax.f32 %v94_v30, %v95_v32  ;;  %v84_v39 = vld [vmem:[#allocation4] sm:$0x3]  ;;  %p210_p4 = pnand %p209_p3, %p203_p0 }
   0xe   :  { %v90_v34 = vrot.slane %v89_v31, 1 }
   0xf   :  { %v79_v19 = vsel %vm55_vm2, %v76_v17, %v69_v16  ;;  %v97_v38 = vrot.slane %v96_v36, 1 }
  0x10   :  { %v81_v21 = vadd.f32 %v79_v19, %v61_v18  ;;  %v91_v37 = vmax.f32 %v89_v31, %v90_v34 }
  0x11   :  { %v98_v40 = vmax.f32 %v96_v36, %v97_v38 }
  0x12   :  { %83 = vst.msk [vmem:[#allocation3] sm:$0x3] %vm18_vm1, %v81_v21 }
  0x13   :  { %v101_v41 = vsel %vm55_vm2, %v98_v40, %v91_v37 }
  0x14   :  { %v103_v42 = vmax.f32 %v84_v39, %v101_v41 }
  0x16   :  { %104 = vst.msk [vmem:[#allocation4] sm:$0x3] %vm16_vm3, %v103_v42 }
  0x19   :  { %v108_v33 = vld [vmem:[#allocation3] sm:$0x3] }
  0x1a   :  { %v109_v35 = vmax.f32 %v108_v33, 1e-09 }
  0x1c   :  { %113 = vperm.xlu1 %199, %v109_v35  }
  0x1d   :  { %v190_v48 = vld.sshfl [vmem:[#allocation4] sm:$0x11 pattern:$0x75316420] }
  0x1e   :  { %v155_v50 = vcombine.high %v190_v48, %v190_v48  ;;  %v162_v51 = vrot.slane %v190_v48, %v124_v49 }
  0x20   :  { %v169_v52 = vrot.slane %v155_v50, %v124_v49  ;;  %172 = vst.msk [vmem:[#allocation5 + $0x1] sm:$0x1] %vm143_vm5, %v162_v51 }
  0x22   :  { %173 = vst.msk [vmem:[#allocation5 + $0x3] sm:$0x1] %vm143_vm5, %v169_v52 }
  0x81   :  { %v29_v53 = vpop.permute.xlu0 %28 }
  0x82   :  { %v36_v54 = vmul.f32 %v29_v53, %v21_v20 }
  0x84   :  { %v39_v55 = vsel %vm38_vm4, %v36_v54, 0.0 }
  0x85   :  { %v40_v56 = vrot.slane %v39_v55, 4  ;;  %v34_v57 = vpop.permute.xlu0 %33 }
  0x86   :  { %v37_v58 = vmul.f32 %v34_v57, %v22_v25 }
  0x87   :  { %v41_v59 = vadd.f32 %v40_v56, %v39_v55 }
  0x88   :  { %v46_v60 = vsel %vm38_vm4, %v37_v58, 0.0 }
  0x89   :  { %v42_v61 = vrot.slane %v41_v59, 2  ;;  %v47_v62 = vrot.slane %v46_v60, 4 }
  0x8b   :  { %v43_v63 = vadd.f32 %v42_v61, %v41_v59  ;;  %v48_v0 = vadd.f32 %v47_v62, %v46_v60 }
  0x8d   :  { %v49_v1 = vrot.slane %v48_v0, 2  ;;  %v44_v2 = vrot.slane %v43_v63, 1 }
  0x8f   :  { %v50_v3 = vadd.f32 %v49_v1, %v48_v0  ;;  %v45_v5 = vadd.f32 %v44_v2, %v43_v63 }
  0x91   :  { %v51_v4 = vrot.slane %v50_v3, 1 }
  0x93   :  { %v52_v7 = vadd.f32 %v51_v4, %v50_v3 }
  0x95   :  { %v56_v8 = vsel %vm55_vm2, %v52_v7, %v45_v5 }
  0x96   :  { %v58_v9 = vadd.f32 %v56_v8, %v25_v6 }
  0x98   :  { %60 = vst.msk [vmem:[#allocation2] sm:$0x3] %vm16_vm3, %v58_v9 }
  0x9b   :  { %v114_v10 = vpop.permute.xlu1 %113 }
  0x9c   :  { %200 = vrcp.f32 %v114_v10 }
  0x9f   :  { %v110_v12 = vld [vmem:[#allocation2] sm:$0x3] }
  0xa6   :  { %v201_v11 = vpop.eup %200 }
  0xa7   :  { %v117_v13 = vmul.f32 %v201_v11, %v110_v12 }
  0xa9   :  { %v125_v14 = vrot.slane %v117_v13, %v124_v49 }
  0xab   :  { %v126_v15 = vcombine.high %v125_v14, %v125_v14  ;;  %v133_v16 = vrot.slane %v125_v14, %v124_v49 }
  0xad   :  { %v140_v17 = vrot.slane %v126_v15, %v124_v49  ;;  %144 = vst.msk [vmem:[#allocation5] sm:$0x1] %vm143_vm5, %v133_v16 }
  0xaf   :  { %145 = vst.msk [vmem:[#allocation5 + $0x2] sm:$0x1] %vm143_vm5, %v140_v17 }
  0xb0   :  { %213 = shalt.err (!%p210_p4)
}
  0xb1   :  { %s214_s20 = scalar_lea.hbm %s291_s2, 64 }
  0xb2   :  { %p215_p5 = scmp.ne.s32.totalorder %s291_s2, %s214_s20  ;;  %p218_p6 = scmp.lt.u32.totalorder %s214_s20, %s291_s2 }
  0xb4   :  { %p220_p7 = pnand %p218_p6, %p215_p5 }
  0xb6   :  { %223 = shalt.err (!%p220_p7)
}
  0xb7   :  { %s231_s25 = smov 32   ;;  %s232_s26 = smov 2  }
  0xb8   :  { %185 = dma.vmem_to_hbm [thread:$0]  %s180_s16, 64, %s291_s2, [#allocation6], %s231_s25, %s231_s25, %s232_s26  }
  0xb9   :  { %224 = dma.done.wait [#allocation6], 64  }
  0xba   :  { %225 = vsyncadd [#allocation6], 4294967232 }
  0xbb   :  { %189 = vsyncpa [#allocation6], 1 }

</bundles_post_ra>
